<compile_context>
chip_gen: v7x
topology: tpu7x:2x2x1
jax: 0.10.0
libtpu: 0.0.40
codegen_flags: <defaults>
</compile_context>

<pallas_src>
import functools

import jax
import jax.numpy as jnp
from jax.experimental import pallas as pl
from jax.experimental.pallas import tpu as pltpu


# ----------------------------------------------------------------------------
# Small helpers.
# ----------------------------------------------------------------------------
def _round_up(x, m):
    return ((x + m - 1) // m) * m


def _aligned_divisor(dim, max_tile, align):
    """Largest multiple of `align` <= max_tile dividing `dim`, else `dim`."""
    if dim <= max_tile:
        return dim
    t = (max_tile // align) * align
    while t >= align:
        if dim % t == 0:
            return t
        t -= align
    # No lane-aligned divisor: fall back to the full extent (still correct;
    # only a VMEM-footprint hazard for very large awkward dims).
    return dim


def _single_buffered_spec(block_shape, index_map):
    """BlockSpec for a loop-invariant (constant-index-map) weight: one buffer."""
    buffered = getattr(pl, "Buffered", None)
    if buffered is not None:
        try:
            return pl.BlockSpec(block_shape, index_map,
                                pipeline_mode=buffered(1))
        except Exception:  # older API without pipeline_mode
            pass
    return pl.BlockSpec(block_shape, index_map)


# ----------------------------------------------------------------------------
# Generic fused dense kernel: out = x @ w + b, tiled over M, N and K with an
# f32 accumulator.  Used for the hoisted input projection and the hoisted
# vocab projection.
# ----------------------------------------------------------------------------
def _dense_kernel(x_ref, w_ref, b_ref, o_ref, acc_ref):
    k = pl.program_id(2)

    @pl.when(k == 0)
    def _():
        acc_ref[...] = jnp.zeros_like(acc_ref)

    acc_ref[...] += jnp.dot(x_ref[...], w_ref[...],
                            preferred_element_type=jnp.float32)

    @pl.when(k == pl.num_programs(2) - 1)
    def _():
        o_ref[...] = (acc_ref[...] + b_ref[...]).astype(o_ref.dtype)


def dense_pallas(x, w, b, out_dtype=jnp.float32):
    """x: (M, K), w: (K, N), b: (1, N) f32 -> (M, N) in out_dtype."""
    M, K = x.shape
    Kw, N = w.shape
    assert Kw == K and b.shape == (1, N)

    # N / K tiles: lane-aligned multiples of 128, a few MiB at most, so the
    # vocab weight is streamed rather than resident (key for v7x 64 MiB VMEM).
    tn = _aligned_divisor(N, 1024, 128)
    tk = _aligned_divisor(K, 1024, 128)
    # Row tile: multiple of 8; pad M so every block is full (no silent
    # fallback to a giant tm=M block for awkward M).
    tm = min(_round_up(M, 8), 256)
    Mp = _round_up(M, tm)
    if Mp != M:
        x = jnp.pad(x, ((0, Mp - M), (0, 0)))

    xb = x.dtype.itemsize
    wb = w.dtype.itemsize
    ob = jnp.dtype(out_dtype).itemsize
    need = (2 * (tm * tk * xb + tk * tn * wb + tn * 4 + tm * tn * ob)
            + tm * tn * 4)
    vmem_limit = int(min(max(2 * need + (8 << 20), 32 << 20), 64 << 20))

    out = pl.pallas_call(
        _dense_kernel,
        out_shape=jax.ShapeDtypeStruct((Mp, N), out_dtype),
        grid_spec=pltpu.PrefetchScalarGridSpec(
            num_scalar_prefetch=0,
            grid=(Mp // tm, N // tn, K // tk),
            in_specs=[
                pl.BlockSpec((tm, tk), lambda i, j, k: (i, k)),
                pl.BlockSpec((tk, tn), lambda i, j, k: (k, j)),
                pl.BlockSpec((1, tn), lambda i, j, k: (0, j)),
            ],
            out_specs=pl.BlockSpec((tm, tn), lambda i, j, k: (i, j)),
            scratch_shapes=[pltpu.VMEM((tm, tn), jnp.float32)],
        ),
        compiler_params=pltpu.CompilerParams(
            dimension_semantics=("parallel", "parallel", "arbitrary"),
            vmem_limit_bytes=vmem_limit),
    )(x, w, b)
    return out[:M] if Mp != M else out


# ----------------------------------------------------------------------------
# LSTM recurrence kernel.  Per grid step: one time-chunk of one batch block.
# gx_ref already contains x @ W_ih^T + (b_ih + b_hh); only the recurrent
# matmul h @ W_hh^T sits on the serial critical path.  Gate math and the h/c
# carries stay f32 (v5e has no bf16 VPU/EUP); only matmul operands are bf16.
# ----------------------------------------------------------------------------
def _lstm_recurrence_kernel(gx_ref, whh_ref, h_out_ref, h_scr, c_scr,
                            *, hidden_size, t_chunk, unroll):
    # Grid = (batch_blocks, time_chunks); time is innermost (sequential), so
    # the t==0 reset fires at the start of every batch-block sweep.
    @pl.when(pl.program_id(1) == 0)
    def _():
        h_scr[...] = jnp.zeros_like(h_scr)
        c_scr[...] = jnp.zeros_like(c_scr)

    H = hidden_size
    whh = whh_ref[...]                      # (H, 4H) bf16, resident weight

    def step(s, carry):
        h, c = carry                                        # f32 carries
        gx = gx_ref[s].astype(jnp.float32)                  # (bb, 4H)
        rec = jnp.dot(h.astype(whh.dtype), whh,
                      preferred_element_type=jnp.float32)
        gates = gx + rec
        # PyTorch gate order: i, f, g, o.  H % 128 == 0 -> lane-aligned views.
        i_g = jax.nn.sigmoid(gates[:, 0 * H:1 * H])
        f_g = jax.nn.sigmoid(gates[:, 1 * H:2 * H])
        g_g = jnp.tanh(gates[:, 2 * H:3 * H])
        o_g = jax.nn.sigmoid(gates[:, 3 * H:4 * H])
        c_new = f_g * c + i_g * g_g
        h_new = o_g * jnp.tanh(c_new)
        h_out_ref[s] = h_new.astype(h_out_ref.dtype)
        return h_new, c_new

    h_fin, c_fin = jax.lax.fori_loop(
        0, t_chunk, step, (h_scr[...], c_scr[...]), unroll=unroll)
    h_scr[...] = h_fin
    c_scr[...] = c_fin


def lstm_recurrence_pallas(gates_x_tbg, w_hh_t, *, t_chunk=None,
                           batch_block=None, out_dtype=jnp.bfloat16):
    """gates_x_tbg: (T, B, 4H) with x@W_ih^T + biases folded in.
    w_hh_t: (H, 4H).  Returns hidden states (T, B, H) in out_dtype."""
    T, B, G = gates_x_tbg.shape
    H = w_hh_t.shape[0]
    assert G == 4 * H
    assert H % 128 == 0, "gate slices require H % 128 == 0 (lane alignment)"
    assert B % 8 == 0, "batch must be a multiple of 8 (sublane tiling)"

    if batch_block is None:
        # v7x megacore: split the batch across both TensorCores, but only when
        # each block stays >= 8 rows; never shrink the recurrent matmul's M.
        batch_block = B // 2 if B >= 16 else B
    assert B % batch_block == 0 and batch_block >= 8

    gx_bytes = jnp.dtype(gates_x_tbg.dtype).itemsize
    out_bytes = jnp.dtype(out_dtype).itemsize
    whh_bytes = int(w_hh_t.size) * w_hh_t.dtype.itemsize

    if t_chunk is None:
        # VMEM-budget-driven chunk (double-buffered gx + h_out chunks, resident
        # W_hh, f32 h/c carries); stays well under the smallest VMEM (v7x).
        budget = 24 << 20
        fixed = whh_bytes + 2 * batch_block * H * 4
        per_t = 2 * batch_block * (4 * H * gx_bytes + H * out_bytes)
        cap = max(1, min(64, (budget - fixed) // max(per_t, 1)))
        t_chunk = 1
        for c in range(1, min(T, cap) + 1):
            if T % c == 0:
                t_chunk = c
    assert T % t_chunk == 0
    unroll = int(min(4, t_chunk))     # partial unroll: scheduler visibility
                                      # without the vreg/icache blowup.

    vmem_need = (2 * t_chunk * batch_block * 4 * H * gx_bytes   # gx (2 bufs)
                 + 2 * whh_bytes                                # weight margin
                 + 2 * t_chunk * batch_block * H * out_bytes    # h_out (2 bufs)
                 + 2 * batch_block * H * 4)                     # h/c scratch
    vmem_limit = int(min(max(2 * vmem_need + (8 << 20), 32 << 20), 64 << 20))

    kernel = functools.partial(_lstm_recurrence_kernel, hidden_size=H,
                               t_chunk=t_chunk, unroll=unroll)
    return pl.pallas_call(
        kernel,
        out_shape=jax.ShapeDtypeStruct((T, B, H), out_dtype),
        grid_spec=pltpu.PrefetchScalarGridSpec(
            num_scalar_prefetch=0,
            grid=(B // batch_block, T // t_chunk),
            in_specs=[
                # per-step precomputed input gates (streamed, double-buffered;
                # on v5e raise to Buffered(3) if the gx DMA shows up exposed).
                pl.BlockSpec((t_chunk, batch_block, G),
                             lambda bi, ti: (ti, bi, 0)),
                # loop-invariant recurrent weight: single buffer, resident.
                _single_buffered_spec((H, G), lambda bi, ti: (0, 0)),
            ],
            out_specs=pl.BlockSpec((t_chunk, batch_block, H),
                                   lambda bi, ti: (ti, bi, 0)),
            scratch_shapes=[
                pltpu.VMEM((batch_block, H), jnp.float32),   # h carry (f32)
                pltpu.VMEM((batch_block, H), jnp.float32),   # c carry (f32)
            ],
        ),
        compiler_params=pltpu.CompilerParams(
            dimension_semantics=("parallel", "arbitrary"),
            vmem_limit_bytes=vmem_limit),
    )(gates_x_tbg, w_hh_t)


# ----------------------------------------------------------------------------
# DecoderRNN forward (matches the PyTorch module semantics).
# ----------------------------------------------------------------------------
def decoder_rnn_forward(params, features, captions):
    """features: (B, E) f32, captions: (B, S) int32 -> logits (B, S, V) f32."""
    captions = captions[:, :-1]                               # (B, S-1)
    # Embedding gather + feature concat are plain-JAX glue.
    embeddings = jnp.take(params["embed"], captions, axis=0)  # (B, S-1, E) bf16
    feats = features[:, None, :].astype(params["embed"].dtype)
    inputs = jnp.concatenate([feats, embeddings], axis=1)     # (B, T, E)
    B, T, E = inputs.shape
    H = params["w_hh_t"].shape[0]
    V = params["w_lin_t"].shape[1]

    # Tiny (T,B,E) transpose so the recurrence reads contiguous per-step slabs.
    inputs_tbe = jnp.transpose(inputs, (1, 0, 2))             # (T, B, E)

    # (1) Hoisted input projection: one (T*B, E) x (E, 4H) matmul, bias folded.
    gates_x = dense_pallas(inputs_tbe.reshape(T * B, E),
                           params["w_ih_t"], params["b_gates"],
                           out_dtype=jnp.bfloat16).reshape(T, B, 4 * H)

    # (2) Serial LSTM recurrence (only h @ W_hh^T on the critical path).
    hiddens_tbh = lstm_recurrence_pallas(gates_x, params["w_hh_t"])  # (T,B,H)

    # (3) Hoisted vocab projection, emitted directly in (B, T, V): only the
    #     small hiddens tensor is transposed (V/H times smaller than logits);
    #     the big logits tensor never takes an extra HBM transpose round-trip.
    hiddens_bth = jnp.transpose(hiddens_tbh, (1, 0, 2)).reshape(B * T, H)
    logits = dense_pallas(hiddens_bth, params["w_lin_t"], params["b_lin"],
                          out_dtype=jnp.float32)
    return logits.reshape(B, T, V)


# ----------------------------------------------------------------------------
# Pure-JAX reference with the same dtype pipeline (for correctness checking).
# ----------------------------------------------------------------------------
def decoder_rnn_reference(params, features, captions):
    captions = captions[:, :-1]
    embeddings = jnp.take(params["embed"], captions, axis=0)
    feats = features[:, None, :].astype(params["embed"].dtype)
    inputs = jnp.concatenate([feats, embeddings], axis=1)      # (B, T, E) bf16
    B = inputs.shape[0]
    H = params["w_hh_t"].shape[0]

    w_ih = params["w_ih_t"].astype(jnp.float32)
    w_hh = params["w_hh_t"].astype(jnp.float32)
    w_lin = params["w_lin_t"].astype(jnp.float32)

    gx = (inputs.astype(jnp.float32) @ w_ih
          + params["b_gates"][0]).astype(jnp.bfloat16)          # (B, T, 4H)
    gx = jnp.transpose(gx, (1, 0, 2)).astype(jnp.float32)       # (T, B, 4H)

    def step(carry, g_t):
        h, c = carry
        gates = g_t + h.astype(jnp.bfloat16).astype(jnp.float32) @ w_hh
        i_g = jax.nn.sigmoid(gates[:, 0 * H:1 * H])
        f_g = jax.nn.sigmoid(gates[:, 1 * H:2 * H])
        g_g = jnp.tanh(gates[:, 2 * H:3 * H])
        o_g = jax.nn.sigmoid(gates[:, 3 * H:4 * H])
        c_new = f_g * c + i_g * g_g
        h_new = o_g * jnp.tanh(c_new)
        return (h_new, c_new), h_new.astype(jnp.bfloat16)

    init = (jnp.zeros((B, H), jnp.float32), jnp.zeros((B, H), jnp.float32))
    _, hs = jax.lax.scan(step, init, gx)
    hiddens = jnp.transpose(hs, (1, 0, 2)).astype(jnp.float32)  # (B, T, H)
    return hiddens @ w_lin + params["b_lin"][0]


# ----------------------------------------------------------------------------
# Deterministic parameter init (same shapes as the PyTorch module); weights
# stored in bf16, biases in f32 (b_ih + b_hh folded once).
# ----------------------------------------------------------------------------
def init_params(key, embed_size, hidden_size, vocab_size, dtype=jnp.bfloat16):
    ks = jax.random.split(key, 7)
    scale = 0.1

    def rnd(k, shape):
        return scale * jax.random.normal(k, shape, jnp.float32)

    embed = rnd(ks[0], (vocab_size, embed_size))
    w_ih = rnd(ks[1], (4 * hidden_size, embed_size))
    w_hh = rnd(ks[2], (4 * hidden_size, hidden_size))
    b_ih = rnd(ks[3], (4 * hidden_size,))
    b_hh = rnd(ks[4], (4 * hidden_size,))
    w_lin = rnd(ks[5], (vocab_size, hidden_size))
    b_lin = rnd(ks[6], (vocab_size,))
    return {
        "embed": embed.astype(dtype),
        "w_ih_t": w_ih.T.astype(dtype),                   # (E, 4H)
        "w_hh_t": w_hh.T.astype(dtype),                   # (H, 4H)
        "b_gates": (b_ih + b_hh)[None, :].astype(jnp.float32),  # (1, 4H)
        "w_lin_t": w_lin.T.astype(dtype),                 # (H, V)
        "b_lin": b_lin[None, :].astype(jnp.float32),      # (1, V)
    }


if __name__ == "__main__":
    # Small but hardware-friendly: B multiple of 8, H and V multiples of 128.
    embed_size, hidden_size, vocab_size = 32, 128, 256
    batch, seq = 8, 8

    key = jax.random.PRNGKey(0)
    kp, kf, kc = jax.random.split(key, 3)

    params = init_params(kp, embed_size, hidden_size, vocab_size)
    features = jax.random.normal(kf, (batch, embed_size), jnp.float32)
    captions = jax.random.randint(kc, (batch, seq), 0, vocab_size,
                                  dtype=jnp.int32)

    out = decoder_rnn_forward(params, features, captions)
    out = jax.block_until_ready(out)
    assert out.shape == (batch, seq, vocab_size), out.shape

    ref = decoder_rnn_reference(params, features, captions)
    err = float(jnp.max(jnp.abs(out - ref)))
    # Tolerance covers MXU accumulation-order differences vs XLA matmuls; both
    # paths use the identical bf16 parameter / activation rounding points.
    assert err < 1e-2, f"max abs error {err}"

    print("KERNEL_OK")
</pallas_src>

<mosaic_0001>
module attributes {stable_mosaic.version = 11 : i64} {
  func.func @_dense_kernel(%arg0: i32, %arg1: i32, %arg2: i32, %arg3: memref<64x32xbf16, #tpu.memory_space<vmem>>, %arg4: memref<32x512xbf16, #tpu.memory_space<vmem>>, %arg5: memref<1x512xf32, #tpu.memory_space<vmem>>, %arg6: memref<64x512xbf16, #tpu.memory_space<vmem>>, %arg7: memref<64x512xf32, #tpu.memory_space<vmem>>) attributes {dimension_semantics = [#tpu.dimension_semantics<parallel>, #tpu.dimension_semantics<parallel>, #tpu.dimension_semantics<arbitrary>], iteration_bounds = array<i64: 1, 1, 1>, scalar_prefetch = 0 : i64, scratch_operands = 1 : i64, tpu.core_type = #tpu.core_type<tc>, window_params = [{transform_indices = @transform_0, window_bounds = array<i64: 64, 32>}, {transform_indices = @transform_1, window_bounds = array<i64: 32, 512>}, {transform_indices = @transform_2, window_bounds = array<i64: 1, 512>}, {transform_indices = @transform_3, window_bounds = array<i64: 64, 512>}]} {
    %c0_i32 = arith.constant 0 : i32
    %0 = arith.cmpi eq, %arg2, %c0_i32 : i32
    %1 = arith.extui %0 : i1 to i32
    %c0_i32_0 = arith.constant 0 : i32
    %2 = arith.cmpi ne, %1, %c0_i32_0 : i32
    scf.if %2 {
      %cst_10 = arith.constant 0.000000e+00 : f32
      %12 = vector.broadcast %cst_10 : f32 to vector<64x512xf32>
      %c0_11 = arith.constant 0 : index
      %c0_12 = arith.constant 0 : index
      %13 = vector.load %arg7[%c0_11, %c0_12] : memref<64x512xf32, #tpu.memory_space<vmem>>, vector<64x512xf32>
      tpu.vector_store %arg7[%c0_11, %c0_12], %12 {strides = array<i32>} : memref<64x512xf32, #tpu.memory_space<vmem>>, vector<64x512xf32>,
    } else {
    }
    %c0 = arith.constant 0 : index
    %c0_1 = arith.constant 0 : index
    %3 = vector.load %arg7[%c0, %c0_1] : memref<64x512xf32, #tpu.memory_space<vmem>>, vector<64x512xf32>
    %c0_2 = arith.constant 0 : index
    %c0_3 = arith.constant 0 : index
    %4 = vector.load %arg3[%c0_2, %c0_3] : memref<64x32xbf16, #tpu.memory_space<vmem>>, vector<64x32xbf16>
    %c0_4 = arith.constant 0 : index
    %c0_5 = arith.constant 0 : index
    %5 = vector.load %arg4[%c0_4, %c0_5] : memref<32x512xbf16, #tpu.memory_space<vmem>>, vector<32x512xbf16>
    %cst = arith.constant dense<0.000000e+00> : vector<64x512xf32>
    %6 = tpu.matmul %4, %5, %cst {dimension_numbers = #tpu.dot_dimension_numbers<[1], [0], [0], [1], [0, 0, 1, 1], [], []>} : vector<64x32xbf16>, vector<32x512xbf16>, vector<64x512xf32> -> vector<64x512xf32>
    %7 = arith.addf %3, %6 : vector<64x512xf32>
    %c0_6 = arith.constant 0 : index
    %c0_7 = arith.constant 0 : index
    %8 = vector.load %arg7[%c0_6, %c0_7] : memref<64x512xf32, #tpu.memory_space<vmem>>, vector<64x512xf32>
    tpu.vector_store %arg7[%c0_6, %c0_7], %7 {strides = array<i32>} : memref<64x512xf32, #tpu.memory_space<vmem>>, vector<64x512xf32>,
    %c0_i32_8 = arith.constant 0 : i32
    %9 = arith.cmpi eq, %arg2, %c0_i32_8 : i32
    %10 = arith.extui %9 : i1 to i32
    %c0_i32_9 = arith.constant 0 : i32
    %11 = arith.cmpi ne, %10, %c0_i32_9 : i32
    scf.if %11 {
      %c0_10 = arith.constant 0 : index
      %c0_11 = arith.constant 0 : index
      %12 = vector.load %arg7[%c0_10, %c0_11] : memref<64x512xf32, #tpu.memory_space<vmem>>, vector<64x512xf32>
      %c0_12 = arith.constant 0 : index
      %c0_13 = arith.constant 0 : index
      %13 = vector.load %arg5[%c0_12, %c0_13] : memref<1x512xf32, #tpu.memory_space<vmem>>, vector<1x512xf32>
      %14 = vector.broadcast %13 : vector<1x512xf32> to vector<64x512xf32>
      %15 = arith.addf %12, %14 : vector<64x512xf32>
      %16 = arith.truncf %15 : vector<64x512xf32> to vector<64x512xbf16>
      %c0_14 = arith.constant 0 : index
      %c0_15 = arith.constant 0 : index
      %17 = vector.load %arg6[%c0_14, %c0_15] : memref<64x512xbf16, #tpu.memory_space<vmem>>, vector<64x512xbf16>
      tpu.vector_store %arg6[%c0_14, %c0_15], %16 {strides = array<i32>} : memref<64x512xbf16, #tpu.memory_space<vmem>>, vector<64x512xbf16>,
    } else {
    }
    return
  }
  func.func @transform_0(%arg0: i32, %arg1: i32, %arg2: i32) -> (i32, i32) {
    %c0_i32 = arith.constant 0 : i32
    return %arg0, %arg2 : i32, i32
  }
  func.func @transform_1(%arg0: i32, %arg1: i32, %arg2: i32) -> (i32, i32) {
    %c0_i32 = arith.constant 0 : i32
    return %arg2, %arg1 : i32, i32
  }
  func.func @transform_2(%arg0: i32, %arg1: i32, %arg2: i32) -> (i32, i32) {
    %c0_i32 = arith.constant 0 : i32
    %c0_i32_0 = arith.constant 0 : i32
    return %c0_i32, %arg1 : i32, i32
  }
  func.func @transform_3(%arg0: i32, %arg1: i32, %arg2: i32) -> (i32, i32) {
    %c0_i32 = arith.constant 0 : i32
    return %arg0, %arg1 : i32, i32
  }
}

</mosaic_0001>

<bundles_post_ra>
// kernel: tpu_custom_call.1
= control target key start
LH: loop header
LB: loop body
LE: loop exit
PB: predicated region body
PF: predicated region fallthrough
CT: control target
= control target key end

     0   :  { %8 = vsyncpa [#allocation4], 0  ;;  %s854_s0 = inlined_call_operand.vmem [shape: bf16[64,32], index: 0, kind: input, shape index: {}]   ;;  %s855_s1 = inlined_call_operand.hbm [shape: bf16[32,512], index: 1, kind: input, shape index: {}]   ;;  %s856_s2 = inlined_call_operand.vmem [shape: f32[1,512], index: 2, kind: input, shape index: {}]   ;;  %s857_s3 = inlined_call_operand.hbm [shape: bf16[64,512], index: 3, kind: output, shape index: {}]  }
   0x1   :  { %9 = vsyncpa [#allocation5], 0  ;;  %s736_s12 = smov [#allocation3]   ;;  %s688_s16 = scalar_lea.hbm %s855_s1, 1024 }
   0x2   :  { %s17_s13 = sshll.u32 %s736_s12, 4  ;;  %p689_p0 = scmp.ne.s32.totalorder %s855_s1, %s688_s16  ;;  %s18_s13 = int_to_ptr.vmem [resolvable:$true] %s17_s13 }
   0x3   :  { %p692_p1 = scmp.lt.u32.totalorder %s688_s16, %s855_s1 }
   0x5   :  { %p694_p2 = pnand %p692_p1, %p689_p0 }
   0x7   :  { %697 = shalt.err (!%p694_p2)
}
   0x8   :  { %s698_s21 = scalar_lea.vmem %s18_s13, 1024  ;;  %p703_p4 = scmp.lt.s32.totalorder %s18_s13, %s18_s13 }
   0x9   :  { %p699_p3 = scmp.ne.s32.totalorder %s18_s13, %s698_s21  ;;  %p704_p5 = scmp.lt.s32.totalorder %s698_s21, %s698_s21 }
   0xb   :  { %p705_p6 = por %p704_p5, %p703_p4 }
   0xd   :  { %p706_p7 = pnand %p705_p6, %p699_p3 }
   0xf   :  { %709 = shalt.err (!%p706_p7)
}
  0x10   :  { %s737_s22 = smov 256   ;;  %s738_s23 = smov 16  }
  0x11   :  { %23 = dma.hbm_to_vmem [thread:$0]  %s855_s1, 1024, %s18_s13, [#allocation4], %s737_s22, %s737_s22, %s738_s23  }
  0x12   :  { %732 = dma.done.wait [#allocation4], 1024  }
  0x13   :  { %733 = vsyncadd [#allocation4], 4294966272  ;;  %v739_v0 = vmov 0   ;;  %v672_v1 = vld [vmem:[#allocation3 + $0x4] ss:$16 sps:$4 sm:$0xff]   ;;  %vm174_vm0 = vcmask 261120   ;;  %v434_v13 = vlaneseq }
  0x14   :  { %219 = vmatprep.mubr.bf16.mxu0 %v739_v0  ;;  %292 = vmatprep.mubr.bf16.mxu1 %v739_v0  ;;  %v674_v2 = vld [vmem:[#allocation3 + $0xc] ss:$16 sps:$4 sm:$0xff]   ;;  %v676_v3 = vld [vmem:[#allocation3] ss:$16 sps:$4 sm:$0xff]   ;;  %v677_v4 = vld [vmem:[#allocation3 + $0x8] ss:$16 sps:$4 sm:$0xff]  }
  0x15   :  { %187 = vmatprep.subr.bf16.mxu0 %v672_v1  ;;  %260 = vmatprep.subr.bf16.mxu1 %v674_v2  ;;  %v678_v5 = vld [vmem:[#allocation3 + $0x24] ss:$16 sps:$4 sm:$0xff]   ;;  %v680_v6 = vld [vmem:[#allocation3 + $0x2c] ss:$16 sps:$4 sm:$0xff]   ;;  %v682_v7 = vld [vmem:[#allocation3 + $0x20] ss:$16 sps:$4 sm:$0xff]  }
  0x16   :  { %188 = vmatpush1.bf16.msra.mxu0 %v676_v3  ;;  %261 = vmatpush1.bf16.msra.mxu1 %v677_v4  ;;  %v683_v8 = vld [vmem:[#allocation3 + $0x28] ss:$16 sps:$4 sm:$0xff]   ;;  %v684_v9 = vld [vmem:[%s854_s0] sm:$0xff]   ;;  %v686_v11 = vld [vmem:[%s854_s0 + $0x10] sm:$0xff]   ;;  %v435_v14 = vshrl.u32 %v434_v13, 7 }
  0x17   :  { %189 = vmatprep.subr.bf16.mxu0 %v678_v5  ;;  %262 = vmatprep.subr.bf16.mxu1 %v680_v6  ;;  %v685_v10 = vld [vmem:[%s854_s0 + $0x8] sm:$0xff]   ;;  %v687_v12 = vld [vmem:[%s854_s0 + $0x18] sm:$0xff]   ;;  %v432_v17 = vld [vmem:[%s856_s2] sm:$0xf]  ;;  %s740_s0 = smov [#allocation6]  }
  0x18   :  { %v436_v15 = vsub.s32 0, %v435_v14  ;;  %v444_v16 = vsub.s32 2, %v435_v14  ;;  %v440_v18 = vsub.s32 1, %v435_v14  ;;  %v448_v19 = vsub.s32 3, %v435_v14  ;;  %s603_s2 = sshll.u32 %s740_s0, 4  ;;  %s604_s2 = int_to_ptr.vmem [resolvable:$true] %s603_s2 }
  0x19   :  { %s710_s8 = scalar_lea.vmem %s604_s2, 2048  ;;  %p715_p9 = scmp.lt.s32.totalorder %s604_s2, %s604_s2 }
  0x1a   :  { %190 = vmatpush1.bf16.msra.mxu0 %v682_v7  ;;  %263 = vmatpush1.bf16.msra.mxu1 %v683_v8  ;;  %v799_v20 = vrot.slane %v432_v17, %v436_v15  ;;  %v801_v21 = vrot.slane %v432_v17, %v444_v16  ;;  %v803_v22 = vrot.slane %v432_v17, %v440_v18  ;;  %p711_p8 = scmp.ne.s32.totalorder %s604_s2, %s710_s8  ;;  %p716_p10 = scmp.lt.s32.totalorder %s710_s8, %s710_s8 }
  0x1b   :  { %v805_v23 = vrot.slane %v432_v17, %v448_v19 }
  0x1c   :  { %p717_p11 = por %p716_p10, %p715_p9 }
  0x1d   :  { %627 = vmatmul.mubr.msk.bf16.vlgmr.msra.gmra.mrb[0].mxu0 %vm174_vm0, %v684_v9  ;;  %631 = vmatmul.mubr.msk.bf16.vlgmr.msra.gmra.mrb[0].mxu1 %vm174_vm0, %v684_v9 }
  0x1e   :  { %229 = vmatprep.mubr.bf16.mxu0 %v739_v0  ;;  %302 = vmatprep.mubr.bf16.mxu1 %v739_v0  ;;  %p718_p12 = pnand %p717_p11, %p711_p8 }
  0x25   :  { %628 = vmatmul.mubr.msk.bf16.gmra.mrb[4].mxu0 %vm174_vm0, %v685_v10  ;;  %632 = vmatmul.mubr.msk.bf16.gmra.mrb[4].mxu1 %vm174_vm0, %v685_v10 }
  0x26   :  { %239 = vmatprep.mubr.bf16.mxu0 %v739_v0  ;;  %312 = vmatprep.mubr.bf16.mxu1 %v739_v0 }
  0x2d   :  { %629 = vmatmul.mubr.msk.bf16.gmra.mrb[8].mxu0 %vm174_vm0, %v686_v11  ;;  %633 = vmatmul.mubr.msk.bf16.gmra.mrb[8].mxu1 %vm174_vm0, %v686_v11 }
  0x2e   :  { %249 = vmatprep.mubr.bf16.mxu0 %v739_v0  ;;  %322 = vmatprep.mubr.bf16.mxu1 %v739_v0 }
  0x35   :  { %630 = vmatmul.mubr.msk.bf16.gmra.mrb[12].mxu0 %vm174_vm0, %v687_v12  ;;  %634 = vmatmul.mubr.msk.bf16.gmra.mrb[12].mxu1 %vm174_vm0, %v687_v12 }
  0xf0   :  { %v221_v24 = vpop.f32.mrb[0].mxu0  ;;  %v294_v25 = vpop.f32.mrb[0].mxu1 }
  0xf1   :  { %v454_v26 = vadd.f32 %v799_v20, %v221_v24  ;;  %v456_v27 = vadd.f32 %v801_v21, %v294_v25  ;;  %v223_v28 = vpop.f32.mrb[1].mxu0  ;;  %v296_v29 = vpop.f32.mrb[1].mxu1 }
  0xf2   :  { %v455_v30 = vadd.f32 %v803_v22, %v223_v28  ;;  %v457_v31 = vadd.f32 %v805_v23, %v296_v29  ;;  %v225_v32 = vpop.f32.mrb[2].mxu0  ;;  %v298_v33 = vpop.f32.mrb[2].mxu1 }
  0xf3   :  { %v458_v34 = vadd.f32 %v799_v20, %v225_v32  ;;  %v460_v35 = vadd.f32 %v801_v21, %v298_v33  ;;  %v227_v36 = vpop.f32.mrb[3].mxu0  ;;  %v300_v37 = vpop.f32.mrb[3].mxu1 }
  0xf4   :  { %v651_v38 = vpack.c.bf16 %v455_v30, %v454_v26  ;;  %v652_v39 = vpack.c.bf16 %v457_v31, %v456_v27  ;;  %v459_v40 = vadd.f32 %v803_v22, %v227_v36  ;;  %v461_v41 = vadd.f32 %v805_v23, %v300_v37 }
  0xf6   :  { %582 = vst [vmem:[#allocation6] sm:$0xff] %v651_v38  ;;  %583 = vst [vmem:[#allocation6 + $0x8] sm:$0xff] %v652_v39  ;;  %v653_v42 = vpack.c.bf16 %v459_v40, %v458_v34  ;;  %v654_v43 = vpack.c.bf16 %v461_v41, %v460_v35 }
  0xf8   :  { %584 = vst [vmem:[#allocation6 + $0x10] sm:$0xff] %v653_v42  ;;  %585 = vst [vmem:[#allocation6 + $0x18] sm:$0xff] %v654_v43  ;;  %v231_v44 = vpop.f32.mrb[4].mxu0  ;;  %v304_v45 = vpop.f32.mrb[4].mxu1 }
  0xf9   :  { %v462_v46 = vadd.f32 %v799_v20, %v231_v44  ;;  %v464_v47 = vadd.f32 %v801_v21, %v304_v45  ;;  %v233_v48 = vpop.f32.mrb[5].mxu0  ;;  %v306_v49 = vpop.f32.mrb[5].mxu1 }
  0xfa   :  { %v463_v50 = vadd.f32 %v803_v22, %v233_v48  ;;  %v465_v51 = vadd.f32 %v805_v23, %v306_v49  ;;  %v235_v52 = vpop.f32.mrb[6].mxu0  ;;  %v308_v53 = vpop.f32.mrb[6].mxu1 }
  0xfb   :  { %v466_v54 = vadd.f32 %v799_v20, %v235_v52  ;;  %v468_v55 = vadd.f32 %v801_v21, %v308_v53  ;;  %v237_v56 = vpop.f32.mrb[7].mxu0  ;;  %v310_v57 = vpop.f32.mrb[7].mxu1 }
  0xfc   :  { %v655_v58 = vpack.c.bf16 %v463_v50, %v462_v46  ;;  %v656_v59 = vpack.c.bf16 %v465_v51, %v464_v47  ;;  %v467_v60 = vadd.f32 %v803_v22, %v237_v56  ;;  %v469_v61 = vadd.f32 %v805_v23, %v310_v57 }
  0xfe   :  { %586 = vst [vmem:[#allocation6 + $0x20] sm:$0xff] %v655_v58  ;;  %587 = vst [vmem:[#allocation6 + $0x28] sm:$0xff] %v656_v59  ;;  %v657_v62 = vpack.c.bf16 %v467_v60, %v466_v54  ;;  %v658_v63 = vpack.c.bf16 %v469_v61, %v468_v55 }
 0x100   :  { %588 = vst [vmem:[#allocation6 + $0x30] sm:$0xff] %v657_v62  ;;  %589 = vst [vmem:[#allocation6 + $0x38] sm:$0xff] %v658_v63  ;;  %v241_v0 = vpop.f32.mrb[8].mxu0  ;;  %v314_v1 = vpop.f32.mrb[8].mxu1 }
 0x101   :  { %v470_v2 = vadd.f32 %v799_v20, %v241_v0  ;;  %v472_v3 = vadd.f32 %v801_v21, %v314_v1  ;;  %v243_v4 = vpop.f32.mrb[9].mxu0  ;;  %v316_v5 = vpop.f32.mrb[9].mxu1 }
 0x102   :  { %v471_v6 = vadd.f32 %v803_v22, %v243_v4  ;;  %v473_v7 = vadd.f32 %v805_v23, %v316_v5  ;;  %v245_v8 = vpop.f32.mrb[10].mxu0  ;;  %v318_v9 = vpop.f32.mrb[10].mxu1 }
 0x103   :  { %v474_v10 = vadd.f32 %v799_v20, %v245_v8  ;;  %v476_v11 = vadd.f32 %v801_v21, %v318_v9  ;;  %v247_v12 = vpop.f32.mrb[11].mxu0  ;;  %v320_v13 = vpop.f32.mrb[11].mxu1 }
 0x104   :  { %v659_v14 = vpack.c.bf16 %v471_v6, %v470_v2  ;;  %v660_v15 = vpack.c.bf16 %v473_v7, %v472_v3  ;;  %v475_v16 = vadd.f32 %v803_v22, %v247_v12  ;;  %v477_v17 = vadd.f32 %v805_v23, %v320_v13 }
 0x106   :  { %590 = vst [vmem:[#allocation6 + $0x40] sm:$0xff] %v659_v14  ;;  %591 = vst [vmem:[#allocation6 + $0x48] sm:$0xff] %v660_v15  ;;  %v661_v18 = vpack.c.bf16 %v475_v16, %v474_v10  ;;  %v662_v19 = vpack.c.bf16 %v477_v17, %v476_v11 }
 0x108   :  { %592 = vst [vmem:[#allocation6 + $0x50] sm:$0xff] %v661_v18  ;;  %593 = vst [vmem:[#allocation6 + $0x58] sm:$0xff] %v662_v19  ;;  %v251_v24 = vpop.f32.mrb[12].mxu0  ;;  %v324_v25 = vpop.f32.mrb[12].mxu1 }
 0x109   :  { %v478_v26 = vadd.f32 %v799_v20, %v251_v24  ;;  %v480_v27 = vadd.f32 %v801_v21, %v324_v25  ;;  %v253_v28 = vpop.f32.mrb[13].mxu0  ;;  %v326_v29 = vpop.f32.mrb[13].mxu1 }
 0x10a   :  { %v479_v30 = vadd.f32 %v803_v22, %v253_v28  ;;  %v481_v31 = vadd.f32 %v805_v23, %v326_v29  ;;  %v255_v32 = vpop.f32.mrb[14].mxu0  ;;  %v328_v33 = vpop.f32.mrb[14].mxu1 }
 0x10b   :  { %v482_v34 = vadd.f32 %v799_v20, %v255_v32  ;;  %v484_v35 = vadd.f32 %v801_v21, %v328_v33  ;;  %v257_v36 = vpop.f32.mrb[15].mxu0  ;;  %v330_v37 = vpop.f32.mrb[15].mxu1 }
 0x10c   :  { %v663_v38 = vpack.c.bf16 %v479_v30, %v478_v26  ;;  %v664_v39 = vpack.c.bf16 %v481_v31, %v480_v27  ;;  %v483_v40 = vadd.f32 %v803_v22, %v257_v36  ;;  %v485_v41 = vadd.f32 %v805_v23, %v330_v37 }
 0x10e   :  { %594 = vst [vmem:[#allocation6 + $0x60] sm:$0xff] %v663_v38  ;;  %595 = vst [vmem:[#allocation6 + $0x68] sm:$0xff] %v664_v39  ;;  %v665_v42 = vpack.c.bf16 %v483_v40, %v482_v34  ;;  %v666_v43 = vpack.c.bf16 %v485_v41, %v484_v35 }
 0x110   :  { %596 = vst [vmem:[#allocation6 + $0x70] sm:$0xff] %v665_v42  ;;  %597 = vst [vmem:[#allocation6 + $0x78] sm:$0xff] %v666_v43 }
 0x111   :  { %721 = shalt.err (!%p718_p12)
}
 0x112   :  { %s722_s11 = scalar_lea.hbm %s857_s3, 2048 }
 0x113   :  { %p723_p13 = scmp.ne.s32.totalorder %s857_s3, %s722_s11  ;;  %p726_p0 = scmp.lt.u32.totalorder %s722_s11, %s857_s3 }
 0x115   :  { %p728_p1 = pnand %p726_p0, %p723_p13 }
 0x117   :  { %731 = shalt.err (!%p728_p1)
}
 0x118   :  { %609 = dma.vmem_to_hbm [thread:$0]  %s604_s2, 2048, %s857_s3, [#allocation5], %s737_s22, %s737_s22, %s738_s23  }
 0x119   :  { %734 = dma.done.wait [#allocation5], 2048  }
 0x11a   :  { %735 = vsyncadd [#allocation5], 4294965248 }
 0x11b   :  { %613 = vsyncpa [#allocation4], 1 }
 0x11c   :  { %614 = vsyncpa [#allocation5], 1 }

</bundles_post_ra>
